<compile_context>
chip_gen: v6e
topology: v6e:2x2x1
jax: 0.10.0
libtpu: 0.0.40
codegen_flags: <defaults>
</compile_context>

<pallas_src>
import jax
import jax.numpy as jnp
from jax import lax
from jax.experimental import pallas as pl
from jax.experimental.pallas import tpu as pltpu


HIDDEN = 128


def residual_mlp_kernel(x_ref, w_in_ref, b_in_ref,
                        w12_ref, b12_ref,
                        w_out_ref, b_out_ref,
                        o_ref):
    # x is streamed in the matmul dtype (f32 or bf16); accumulation is always f32.
    x = x_ref[...]

    # fc_in + ReLU
    x1 = jnp.dot(x, w_in_ref[...],
                 preferred_element_type=jnp.float32) + b_in_ref[...]
    x1 = jnp.maximum(x1, 0.0)

    # fc_res1 -> fc_res2 fused into one 128x128 matmul (no activation between them).
    res = jnp.dot(x1.astype(w12_ref.dtype), w12_ref[...],
                  preferred_element_type=jnp.float32) + b12_ref[...]

    # residual add + ReLU
    x2 = jnp.maximum(x1 + res, 0.0)

    # Final Linear(128, 1), emitted lane-dense as a (1, TB) row:
    #   logits[0, b] = sum_k w_out[0, k] * x2[b, k]
    logits = lax.dot_general(
        w_out_ref[...], x2,
        dimension_numbers=(((1,), (1,)), ((), ())),
        preferred_element_type=jnp.float32) + b_out_ref[0, 0]

    o_ref[...] = jax.nn.sigmoid(logits).astype(o_ref.dtype)


def residual_mlp(x, params, *, block_batch=4096, use_bf16_matmul=False):
    """x: (B, input_dim) -> (B, 1) float32.

    block_batch: batch tile (2048-4096 recommended; per-step work must dwarf the
    ~0.35 us grid-step overhead). Resident weights are ~80 KiB so VMEM use is
    dominated by the x tile + (TB,128) f32 intermediates (~0.6 KiB/row); TB=4096
    is ~8 MiB, well under the 48 MiB scoped limit set below.
    use_bf16_matmul: stream x and run both big matmuls with bf16 MXU operands
    (f32 accumulation). Recommended on all generations (v5e's MXU is bf16-native;
    on v6e/v7x it also halves the HBM x stream) when the accuracy budget allows.
    """
    (w_in, b_in, w1, b1, w2, b2, w_out, b_out) = params
    B, input_dim = x.shape
    H = HIDDEN

    # ---- wrapper-side weight prep (runs once under jit) --------------------
    # Fuse the residual linears: (x1@W1 + b1)@W2 + b2 == x1@(W1@W2) + (b1@W2 + b2).
    w12 = w1 @ w2
    b12 = b1 @ w2 + b2

    mm_dtype = jnp.bfloat16 if use_bf16_matmul else jnp.float32
    if x.dtype != mm_dtype:
        x = x.astype(mm_dtype)          # bf16 x stream: halves dominant HBM traffic
    w_in_c = w_in.astype(mm_dtype)
    w12_c = w12.astype(mm_dtype)

    b_in_r = b_in.reshape(1, H).astype(jnp.float32)
    b12_r = b12.reshape(1, H).astype(jnp.float32)
    w_out_r = w_out.reshape(1, H).astype(jnp.float32)   # (128, 1) -> (1, 128) row
    b_out_r = b_out.reshape(1, 1).astype(jnp.float32)

    # ---- batch tiling (no wrapper-side padding copy) ------------------------
    TB = min(block_batch, B)
    if TB < B:
        TB = max(8, (TB // 8) * 8)       # interior blocks must be sublane-aligned
    num_blocks = pl.cdiv(B, TB)
    if num_blocks == 1 and B >= 1024:
        # v7x megacore: give the "parallel" batch axis at least two grid steps.
        TB = ((pl.cdiv(B, 2) + 7) // 8) * 8
        num_blocks = pl.cdiv(B, TB)
    grid = (num_blocks,)

    const = lambda i: (0, 0)             # weights/biases stay VMEM-resident

    flops = 2 * B * H * (input_dim + H + 1)
    bytes_accessed = (B * input_dim * x.dtype.itemsize         # x stream
                      + B * 4                                   # output
                      + (input_dim * H + H * H + 3 * H + 1) * 4)  # resident params
    cost = pl.CostEstimate(flops=flops, transcendentals=B,
                           bytes_accessed=bytes_accessed)

    out = pl.pallas_call(
        residual_mlp_kernel,
        out_shape=jax.ShapeDtypeStruct((num_blocks, TB), jnp.float32),  # lane-dense
        grid=grid,
        in_specs=[
            pl.BlockSpec((TB, input_dim), lambda i: (i, 0)),     # x tile (streamed)
            pl.BlockSpec((input_dim, H), const),                 # W_in   (resident)
            pl.BlockSpec((1, H), const),                         # b_in
            pl.BlockSpec((H, H), const),                         # W12 (fused)
            pl.BlockSpec((1, H), const),                         # b12 (fused)
            pl.BlockSpec((1, H), const),                         # W_out row
            pl.BlockSpec(memory_space=pltpu.MemorySpace.SMEM),   # b_out scalar
        ],
        out_specs=pl.BlockSpec((1, TB), lambda i: (i, 0)),
        compiler_params=pltpu.CompilerParams(
            dimension_semantics=("parallel",),
            vmem_limit_bytes=48 * 1024 * 1024),
        cost_estimate=cost,
    )(x, w_in_c, b_in_r, w12_c, b12_r, w_out_r, b_out_r)

    # Ragged-tail rows (if any) were computed on masked/garbage input rows; they
    # are row-local and dropped here.
    return out.reshape(-1, 1)[:B]


def init_params(key, input_dim, hidden=HIDDEN):
    """Deterministic synthetic parameters, stored as (in_features, out_features)."""
    ks = jax.random.split(key, 8)

    def lin(kw, kb, fan_in, fan_out):
        bound = 1.0 / jnp.sqrt(fan_in)
        w = jax.random.uniform(kw, (fan_in, fan_out), jnp.float32, -bound, bound)
        b = jax.random.uniform(kb, (fan_out,), jnp.float32, -bound, bound)
        return w, b

    w_in, b_in = lin(ks[0], ks[1], input_dim, hidden)
    w1, b1 = lin(ks[2], ks[3], hidden, hidden)
    w2, b2 = lin(ks[4], ks[5], hidden, hidden)
    w_out, b_out = lin(ks[6], ks[7], hidden, 1)
    return (w_in, b_in, w1, b1, w2, b2, w_out, b_out)


def residual_mlp_ref(x, params):
    """Pure-JAX reference mirroring the PyTorch module (two residual matmuls)."""
    (w_in, b_in, w1, b1, w2, b2, w_out, b_out) = params
    x1 = jax.nn.relu(x @ w_in + b_in)
    res = (x1 @ w1 + b1) @ w2 + b2
    x2 = jax.nn.relu(x1 + res)
    return jax.nn.sigmoid(x2 @ w_out + b_out)


if __name__ == "__main__":
    key = jax.random.PRNGKey(0)
    k_p, k_x, k_x2 = jax.random.split(key, 3)

    input_dim = 32
    params = init_params(k_p, input_dim)

    # Small single-block case.
    B = 8
    x = jax.random.normal(k_x, (B, input_dim), jnp.float32)
    y = residual_mlp(x, params)
    jax.block_until_ready(y)
    y_ref = residual_mlp_ref(x, params)
    assert y.shape == (B, 1)
    assert jnp.allclose(y, y_ref, atol=1e-4, rtol=1e-4), "mismatch vs. reference (f32)"

    # Multi-block grid with a ragged last block (no wrapper-side padding copy):
    # exercises resident weights, lane-dense output, and partial-block masking.
    B2 = 200
    x2 = jax.random.normal(k_x2, (B2, input_dim), jnp.float32)
    y2 = residual_mlp(x2, params, block_batch=64)
    jax.block_until_ready(y2)
    y2_ref = residual_mlp_ref(x2, params)
    assert y2.shape == (B2, 1)
    assert jnp.allclose(y2, y2_ref, atol=1e-4, rtol=1e-4), "mismatch vs. reference (grid)"

    # bf16 MXU-operand fast path (bf16 x stream, f32 accumulation); looser tolerance
    # by design (fused W12 cast to bf16 compounds a little extra error).
    y2_bf16 = residual_mlp(x2, params, block_batch=64, use_bf16_matmul=True)
    jax.block_until_ready(y2_bf16)
    assert jnp.allclose(y2_bf16, y2_ref, atol=5e-2), "mismatch vs. reference (bf16)"

    print("KERNEL_OK")
</pallas_src>

<mosaic_0001>
module attributes {stable_mosaic.version = 11 : i64} {
  func.func @residual_mlp_kernel(%arg0: i32, %arg1: memref<8x32xf32, #tpu.memory_space<vmem>>, %arg2: memref<32x128xf32, #tpu.memory_space<vmem>>, %arg3: memref<1x128xf32, #tpu.memory_space<vmem>>, %arg4: memref<128x128xf32, #tpu.memory_space<vmem>>, %arg5: memref<1x128xf32, #tpu.memory_space<vmem>>, %arg6: memref<1x128xf32, #tpu.memory_space<vmem>>, %arg7: memref<1x1xf32, #tpu.memory_space<smem>>, %arg8: memref<1x8xf32, #tpu.memory_space<vmem>>) attributes {dimension_semantics = [#tpu.dimension_semantics<parallel>], iteration_bounds = array<i64: 1>, scalar_prefetch = 0 : i64, scratch_operands = 0 : i64, tpu.core_type = #tpu.core_type<tc>, window_params = [{transform_indices = @transform_0, window_bounds = array<i64: 8, 32>}, {pipeline_mode = #tpu.pipeline_mode<synchronous>, transform_indices = @transform_1, window_bounds = array<i64: 32, 128>}, {pipeline_mode = #tpu.pipeline_mode<synchronous>, transform_indices = @transform_2, window_bounds = array<i64: 1, 128>}, {pipeline_mode = #tpu.pipeline_mode<synchronous>, transform_indices = @transform_3, window_bounds = array<i64: 128, 128>}, {pipeline_mode = #tpu.pipeline_mode<synchronous>, transform_indices = @transform_4, window_bounds = array<i64: 1, 128>}, {pipeline_mode = #tpu.pipeline_mode<synchronous>, transform_indices = @transform_5, window_bounds = array<i64: 1, 128>}, {transform_indices = @transform_6, window_bounds = array<i64: 1, 1>}, {transform_indices = @transform_7, window_bounds = array<i64: 1, 8>}]} {
    %c0 = arith.constant 0 : index
    %c0_0 = arith.constant 0 : index
    %0 = vector.load %arg1[%c0, %c0_0] : memref<8x32xf32, #tpu.memory_space<vmem>>, vector<8x32xf32>
    %c0_1 = arith.constant 0 : index
    %c0_2 = arith.constant 0 : index
    %1 = vector.load %arg2[%c0_1, %c0_2] : memref<32x128xf32, #tpu.memory_space<vmem>>, vector<32x128xf32>
    %cst = arith.constant dense<0.000000e+00> : vector<8x128xf32>
    %2 = tpu.matmul %0, %1, %cst {dimension_numbers = #tpu.dot_dimension_numbers<[1], [0], [0], [1], [0, 0, 1, 1], [], []>} : vector<8x32xf32>, vector<32x128xf32>, vector<8x128xf32> -> vector<8x128xf32>
    %c0_3 = arith.constant 0 : index
    %c0_4 = arith.constant 0 : index
    %3 = vector.load %arg3[%c0_3, %c0_4] : memref<1x128xf32, #tpu.memory_space<vmem>>, vector<1x128xf32>
    %4 = vector.broadcast %3 : vector<1x128xf32> to vector<8x128xf32>
    %5 = arith.addf %2, %4 : vector<8x128xf32>
    %cst_5 = arith.constant 0.000000e+00 : f32
    %6 = vector.broadcast %cst_5 : f32 to vector<8x128xf32>
    %7 = arith.maximumf %5, %6 : vector<8x128xf32>
    %c0_6 = arith.constant 0 : index
    %c0_7 = arith.constant 0 : index
    %8 = vector.load %arg4[%c0_6, %c0_7] : memref<128x128xf32, #tpu.memory_space<vmem>>, vector<128x128xf32>
    %cst_8 = arith.constant dense<0.000000e+00> : vector<8x128xf32>
    %9 = tpu.matmul %7, %8, %cst_8 {dimension_numbers = #tpu.dot_dimension_numbers<[1], [0], [0], [1], [0, 0, 1, 1], [], []>} : vector<8x128xf32>, vector<128x128xf32>, vector<8x128xf32> -> vector<8x128xf32>
    %c0_9 = arith.constant 0 : index
    %c0_10 = arith.constant 0 : index
    %10 = vector.load %arg5[%c0_9, %c0_10] : memref<1x128xf32, #tpu.memory_space<vmem>>, vector<1x128xf32>
    %11 = vector.broadcast %10 : vector<1x128xf32> to vector<8x128xf32>
    %12 = arith.addf %9, %11 : vector<8x128xf32>
    %13 = arith.addf %7, %12 : vector<8x128xf32>
    %cst_11 = arith.constant 0.000000e+00 : f32
    %14 = vector.broadcast %cst_11 : f32 to vector<8x128xf32>
    %15 = arith.maximumf %13, %14 : vector<8x128xf32>
    %c0_12 = arith.constant 0 : index
    %c0_13 = arith.constant 0 : index
    %16 = vector.load %arg6[%c0_12, %c0_13] : memref<1x128xf32, #tpu.memory_space<vmem>>, vector<1x128xf32>
    %cst_14 = arith.constant dense<0.000000e+00> : vector<1x8xf32>
    %17 = tpu.matmul %16, %15, %cst_14 {dimension_numbers = #tpu.dot_dimension_numbers<[1], [1], [0], [0], [0, 0, 1, 0], [], []>} : vector<1x128xf32>, vector<8x128xf32>, vector<1x8xf32> -> vector<1x8xf32>
    %c0_15 = arith.constant 0 : index
    %c0_16 = arith.constant 0 : index
    %18 = memref.load %arg7[%c0_15, %c0_16] : memref<1x1xf32, #tpu.memory_space<smem>>
    %19 = vector.broadcast %18 : f32 to vector<1x8xf32>
    %20 = arith.addf %17, %19 : vector<1x8xf32>
    %21 = arith.negf %20 : vector<1x8xf32>
    %22 = math.exp %21 : vector<1x8xf32>
    %cst_17 = arith.constant 1.000000e+00 : f32
    %23 = vector.broadcast %cst_17 : f32 to vector<1x8xf32>
    %24 = arith.addf %23, %22 : vector<1x8xf32>
    %25 = arith.divf %23, %24 : vector<1x8xf32>
    %c0_18 = arith.constant 0 : index
    %c0_19 = arith.constant 0 : index
    %26 = vector.load %arg8[%c0_18, %c0_19] : memref<1x8xf32, #tpu.memory_space<vmem>>, vector<1x8xf32>
    tpu.vector_store %arg8[%c0_18, %c0_19], %25 {strides = array<i32>} : memref<1x8xf32, #tpu.memory_space<vmem>>, vector<1x8xf32>,
    return
  }
  func.func @transform_0(%arg0: i32) -> (i32, i32) {
    %c0_i32 = arith.constant 0 : i32
    %c0_i32_0 = arith.constant 0 : i32
    return %arg0, %c0_i32 : i32, i32
  }
  func.func @transform_1(%arg0: i32) -> (i32, i32) {
    %c0_i32 = arith.constant 0 : i32
    %c0_i32_0 = arith.constant 0 : i32
    %c0_i32_1 = arith.constant 0 : i32
    return %c0_i32, %c0_i32_0 : i32, i32
  }
  func.func @transform_2(%arg0: i32) -> (i32, i32) {
    %c0_i32 = arith.constant 0 : i32
    %c0_i32_0 = arith.constant 0 : i32
    %c0_i32_1 = arith.constant 0 : i32
    return %c0_i32, %c0_i32_0 : i32, i32
  }
  func.func @transform_3(%arg0: i32) -> (i32, i32) {
    %c0_i32 = arith.constant 0 : i32
    %c0_i32_0 = arith.constant 0 : i32
    %c0_i32_1 = arith.constant 0 : i32
    return %c0_i32, %c0_i32_0 : i32, i32
  }
  func.func @transform_4(%arg0: i32) -> (i32, i32) {
    %c0_i32 = arith.constant 0 : i32
    %c0_i32_0 = arith.constant 0 : i32
    %c0_i32_1 = arith.constant 0 : i32
    return %c0_i32, %c0_i32_0 : i32, i32
  }
  func.func @transform_5(%arg0: i32) -> (i32, i32) {
    %c0_i32 = arith.constant 0 : i32
    %c0_i32_0 = arith.constant 0 : i32
    %c0_i32_1 = arith.constant 0 : i32
    return %c0_i32, %c0_i32_0 : i32, i32
  }
  func.func @transform_6(%arg0: i32) -> (i32, i32) {
    %c0_i32 = arith.constant 0 : i32
    %c0_i32_0 = arith.constant 0 : i32
    %c0_i32_1 = arith.constant 0 : i32
    return %c0_i32, %c0_i32_0 : i32, i32
  }
  func.func @transform_7(%arg0: i32) -> (i32, i32) {
    %c0_i32 = arith.constant 0 : i32
    %c0_i32_0 = arith.constant 0 : i32
    return %arg0, %c0_i32 : i32, i32
  }
}

</mosaic_0001>

<bundles_post_ra>
// kernel: tpu_custom_call.1
= control target key start
LH: loop header
LB: loop body
LE: loop exit
PB: predicated region body
PF: predicated region fallthrough
CT: control target
= control target key end

     0   :  { %13 = vsyncpa [#allocation4], 0  ;;  %s622_s0 = inlined_call_operand.hbm [shape: f32[8,32], index: 0, kind: input, shape index: {}]   ;;  %s623_s1 = inlined_call_operand.hbm [shape: f32[32,128], index: 1, kind: input, shape index: {}]   ;;  %s624_s2 = inlined_call_operand.vmem [shape: f32[1,128], index: 2, kind: input, shape index: {}]   ;;  %s625_s3 = inlined_call_operand.hbm [shape: f32[128,128], index: 3, kind: input, shape index: {}]   ;;  %s626_s4 = inlined_call_operand.vmem [shape: f32[1,128], index: 4, kind: input, shape index: {}]   ;;  %s627_s5 = inlined_call_operand.vmem [shape: f32[1,128], index: 5, kind: input, shape index: {}]   ;;  %s628_s6 = inlined_call_operand.<no memory space> [shape: f32[1,1], index: 6, kind: input, shape index: {}]   ;;  %s629_s7 = inlined_call_operand.hbm [shape: f32[1,8], index: 7, kind: output, shape index: {}]  }
   0x1   :  { %14 = vsyncpa [#allocation7], 0 }
   0x2   :  { %15 = vsyncpa [#allocation5], 0  ;;  %s523_s24 = smov [#allocation6]  }
   0x3   :  { %s31_s25 = sshll.u32 %s523_s24, 4  ;;  %s32_s25 = int_to_ptr.vmem [resolvable:$true] %s31_s25 }
   0x4   :  { %s445_s26 = scalar_lea.vmem %s32_s25, 512  ;;  %p450_p1 = scmp.lt.s32.totalorder %s32_s25, %s32_s25 }
   0x5   :  { %p446_p0 = scmp.ne.s32.totalorder %s32_s25, %s445_s26  ;;  %p451_p2 = scmp.lt.s32.totalorder %s445_s26, %s445_s26 }
   0x7   :  { %p452_p3 = por %p451_p2, %p450_p1 }
   0x9   :  { %p453_p4 = pnand %p452_p3, %p446_p0 }
   0xb   :  { %456 = shalt.err (!%p453_p4)
}
   0xc   :  { %s524_s27 = smov 128   ;;  %s525_s28 = smov 8  }
   0xd   :  { %37 = dma.hbm_to_vmem [thread:$0]  %s623_s1, 512, %s32_s25, [#allocation7], %s524_s27, %s524_s27, %s525_s28  }
   0xe   :  { %s526_s8 = smov [#allocation3]   ;;  %s527_s10 = smov [#allocation8]  }
   0xf   :  { %s22_s9 = sshll.u32 %s526_s8, 4  ;;  %s45_s11 = sshll.u32 %s527_s10, 4  ;;  %s23_s9 = int_to_ptr.vmem [resolvable:$true] %s22_s9  ;;  %s46_s11 = int_to_ptr.vmem [resolvable:$true] %s45_s11 }
  0x10   :  { %s465_s12 = scalar_lea.vmem %s23_s9, 128  ;;  %p470_p6 = scmp.lt.s32.totalorder %s23_s9, %s23_s9 }
  0x11   :  { %p466_p5 = scmp.ne.s32.totalorder %s23_s9, %s465_s12  ;;  %p471_p7 = scmp.lt.s32.totalorder %s465_s12, %s465_s12 }
  0x13   :  { %p472_p8 = por %p471_p7, %p470_p6 }
  0x15   :  { %p473_p9 = pnand %p472_p8, %p466_p5 }
  0x17   :  { %476 = shalt.err (!%p473_p9)
}
  0x18   :  { %25 = dma.hbm_to_vmem [thread:$0]  %s622_s0, 128, %s23_s9, [#allocation4]  }
  0x19   :  { %s485_s15 = scalar_lea.vmem %s46_s11, 2048  ;;  %p490_p11 = scmp.lt.s32.totalorder %s46_s11, %s46_s11 }
  0x1a   :  { %p486_p10 = scmp.ne.s32.totalorder %s46_s11, %s485_s15  ;;  %p491_p12 = scmp.lt.s32.totalorder %s485_s15, %s485_s15 }
  0x1c   :  { %p492_p13 = por %p491_p12, %p490_p11 }
  0x1e   :  { %p493_p0 = pnand %p492_p13, %p486_p10 }
  0x20   :  { %496 = shalt.err (!%p493_p0)
}
  0x21   :  { %51 = dma.hbm_to_vmem [thread:$0]  %s625_s3, 2048, %s46_s11, [#allocation7], %s524_s27, %s524_s27, %s525_s28  }
  0x22   :  { %517 = dma.done.wait [#allocation4], 128  }
  0x23   :  { %518 = vsyncadd [#allocation4], 4294967168 }
  0x24   :  { %519 = dma.done.wait [#allocation7], 2560  }
  0x25   :  { %520 = vsyncadd [#allocation7], 4294964736  ;;  %v528_v0 = vmov 0.0   ;;  %vm529_vm0 = vmmov 0   ;;  %v71_v1 = vld [vmem:[#allocation6 + $0x18] sm:$0xff]  ;;  %v70_v2 = vld [vmem:[#allocation6 + $0x10] sm:$0xff]  ;;  %v251_v34 = vstv %s628_s6 }
  0x26   :  { %374 = vmatprep.subr.mxu0 %v528_v0  ;;  %382 = vmatprep.mubr.msk.f32.mxu0 %vm529_vm0, %v528_v0  ;;  %v169_v3 = vld [vmem:[#allocation8 + $0x78] sm:$0xff]  ;;  %v69_v4 = vld [vmem:[#allocation6 + $0x8] sm:$0xff]  ;;  %v168_v5 = vld [vmem:[#allocation8 + $0x70] sm:$0xff]  ;;  %vm79_vm1 = vcmask 261120   ;;  %vm328_vm2 = vcmask 57344  }
  0x27   :  { %385 = vmatprep.subr.mxu1 %v528_v0  ;;  %417 = vmatprep.mubr.msk.f32.mxu1 %vm529_vm0, %v528_v0  ;;  %v167_v6 = vld [vmem:[#allocation8 + $0x68] sm:$0xff]  ;;  %v68_v7 = vld [vmem:[#allocation6] sm:$0xff]  ;;  %v67_v8 = vld [vmem:[#allocation3] sm:$0xff] }
  0x28   :  { %375 = vmatpush3.msra.mxu0 %v71_v1  ;;  %386 = vmatpush3.msra.mxu1 %v169_v3  ;;  %v166_v9 = vld [vmem:[#allocation8 + $0x60] sm:$0xff]  ;;  %v165_v10 = vld [vmem:[#allocation8 + $0x58] sm:$0xff]  ;;  %v164_v11 = vld [vmem:[#allocation8 + $0x50] sm:$0xff] }
  0x29   :  { %376 = vmatprep.subr.mxu0 %v528_v0  ;;  %387 = vmatprep.subr.mxu1 %v528_v0  ;;  %v163_v12 = vld [vmem:[#allocation8 + $0x48] sm:$0xff]  ;;  %v162_v13 = vld [vmem:[#allocation8 + $0x40] sm:$0xff]  ;;  %v161_v14 = vld [vmem:[#allocation8 + $0x38] sm:$0xff] }
  0x2a   :  { %377 = vmatpush3.msra.mxu0 %v70_v2  ;;  %388 = vmatpush3.msra.mxu1 %v168_v5  ;;  %v160_v15 = vld [vmem:[#allocation8 + $0x30] sm:$0xff]  ;;  %v159_v16 = vld [vmem:[#allocation8 + $0x28] sm:$0xff]  ;;  %v158_v17 = vld [vmem:[#allocation8 + $0x20] sm:$0xff] }
  0x2b   :  { %378 = vmatprep.subr.mxu0 %v528_v0  ;;  %389 = vmatprep.subr.mxu1 %v528_v0  ;;  %v157_v18 = vld [vmem:[#allocation8 + $0x18] sm:$0xff]  ;;  %v156_v19 = vld [vmem:[#allocation8 + $0x10] sm:$0xff]  ;;  %v155_v20 = vld [vmem:[#allocation8 + $0x8] sm:$0xff] }
  0x2c   :  { %379 = vmatpush3.msra.mxu0 %v69_v4  ;;  %390 = vmatpush3.msra.mxu1 %v167_v6  ;;  %v154_v21 = vld [vmem:[#allocation8] sm:$0xff]  ;;  %v346_v22 = vld [vmem:[%s624_s2] ss:$0 sm:$0xff] }
  0x2d   :  { %380 = vmatprep.subr.mxu0 %v528_v0  ;;  %391 = vmatprep.subr.mxu1 %v528_v0  ;;  %v348_v27 = vld [vmem:[%s626_s4] ss:$0 sm:$0xff]  ;;  %s530_s4 = smov [#allocation9]  }
  0x2e   :  { %381 = vmatpush3.msra.mxu0 %v68_v7  ;;  %392 = vmatpush3.msra.mxu1 %v166_v9  ;;  %v249_v33 = vld [vmem:[%s627_s5] sm:$0x1]  ;;  %s336_s22 = sshll.u32 %s530_s4, 4  ;;  %s337_s22 = int_to_ptr.vmem [resolvable:$true] %s336_s22 }
  0x2f   :  { %383 = vmatmul.mubr.msk.f32.vlgmr.msra.gmra.mxu0 %vm79_vm1, %v67_v8  ;;  %393 = vmatprep.subr.mxu1 %v528_v0  ;;  %s497_s5 = scalar_lea.vmem %s337_s22, 16  ;;  %s501_s23 = scalar_lea.vmem %s337_s22, 32 }
  0x30   :  { %420 = vmatprep.subr.mxu0 %v528_v0  ;;  %394 = vmatpush3.msra.mxu1 %v165_v10  ;;  %p498_p1 = scmp.ne.s32.totalorder %s337_s22, %s497_s5  ;;  %p502_p2 = scmp.lt.s32.totalorder %s337_s22, %s337_s22 }
  0x31   :  { %422 = vmatprep.mubr.msk.f32.mxu0 %vm529_vm0, %v528_v0  ;;  %395 = vmatprep.subr.mxu1 %v528_v0  ;;  %p503_p3 = scmp.lt.s32.totalorder %s501_s23, %s497_s5 }
  0x32   :  { %396 = vmatpush3.msra.mxu1 %v164_v11 }
  0x33   :  { %397 = vmatprep.subr.mxu1 %v528_v0  ;;  %p504_p4 = por %p503_p3, %p502_p2 }
  0x34   :  { %398 = vmatpush3.msra.mxu1 %v163_v12 }
  0x35   :  { %399 = vmatprep.subr.mxu1 %v528_v0  ;;  %p505_p5 = pnand %p504_p4, %p498_p1 }
  0x36   :  { %400 = vmatpush3.msra.mxu1 %v162_v13 }
  0x37   :  { %401 = vmatprep.subr.mxu1 %v528_v0 }
  0x38   :  { %402 = vmatpush3.msra.mxu1 %v161_v14 }
  0x39   :  { %403 = vmatprep.subr.mxu1 %v528_v0 }
  0x3a   :  { %404 = vmatpush3.msra.mxu1 %v160_v15 }
  0x3b   :  { %405 = vmatprep.subr.mxu1 %v528_v0 }
  0x3c   :  { %406 = vmatpush3.msra.mxu1 %v159_v16 }
  0x3d   :  { %407 = vmatprep.subr.mxu1 %v528_v0 }
  0x3e   :  { %408 = vmatpush3.msra.mxu1 %v158_v17 }
  0x3f   :  { %409 = vmatprep.subr.mxu1 %v528_v0 }
  0x40   :  { %410 = vmatpush3.msra.mxu1 %v157_v18 }
  0x41   :  { %411 = vmatprep.subr.mxu1 %v528_v0 }
  0x42   :  { %412 = vmatpush3.msra.mxu1 %v156_v19 }
  0x43   :  { %413 = vmatprep.subr.mxu1 %v528_v0 }
  0x44   :  { %414 = vmatpush3.msra.mxu1 %v155_v20 }
  0x45   :  { %415 = vmatprep.subr.mxu1 %v528_v0 }
  0x46   :  { %416 = vmatpush3.msra.mxu1 %v154_v21 }
  0xef   :  { %v149_v23 = vpop.f32.mrf.mxu0 }
  0xf0   :  { %v150_v24 = vadd.f32 %v346_v22, %v149_v23 }
  0xf1   :  { %v384_v25 = vpop.f32.mrf.mxu0 }
  0xf2   :  { %v153_v26 = vmax.f32 %v150_v24, 0.0 }
  0xf4   :  { %418 = vmatmul.mubr.f32.vlgmr.msra.gmra.mxu1 %v153_v26 }
 0x1b4   :  { %v243_v28 = vpop.f32.mrf.mxu1 }
 0x1b5   :  { %v244_v29 = vadd.f32 %v348_v27, %v243_v28 }
 0x1b6   :  { %v419_v30 = vpop.f32.mrf.mxu1 }
 0x1b7   :  { %v247_v31 = vadd.f32 %v244_v29, %v153_v26 }
 0x1b9   :  { %v248_v32 = vmax.f32 %v247_v31, 0.0 }
 0x1bb   :  { %421 = vmatpush3.xpose.msra.mxu0 %v248_v32 }
 0x1be   :  { %423 = vmatmul.mubr.f32.vlgmr.msra.gmra.mxu0 %v249_v33 }
 0x27e   :  { %v318_v35 = vpop.f32.mrf.mxu0 }
 0x27f   :  { %v319_v36 = vadd.f32 %v318_v35, %v251_v34 }
 0x280   :  { %v424_v37 = vpop.f32.mrf.mxu0 }
 0x281   :  { %v349_v38 = vmul.f32 -1.442695, %v319_v36 }
 0x283   :  { %433 = vpow2.f32 %v349_v38 }
 0x290   :  { %v434_v39 = vpop.eup %433 }
 0x291   :  { %v325_v40 = vadd.f32 1.0, %v434_v39 }
 0x293   :  { %435 = vrcp.f32 %v325_v40 }
 0x2a0   :  { %v436_v41 = vpop.eup %435 }
 0x2a1   :  { %329 = vst.msk [vmem:[#allocation9] sm:$0x1] %vm328_vm2, %v436_v41 }
 0x2a2   :  { %508 = shalt.err (!%p505_p5)
}
 0x2a3   :  { %339 = dma.vmem_to_hbm [thread:$0]  %s337_s22, 16, %s629_s7, [#allocation5]  }
 0x2a4   :  { %521 = dma.done.wait [#allocation5], 16  }
 0x2a5   :  { %522 = vsyncadd [#allocation5], 4294967280 }
 0x2a6   :  { %343 = vsyncpa [#allocation4], 1 }
 0x2a7   :  { %344 = vsyncpa [#allocation7], 1 }
 0x2a8   :  { %345 = vsyncpa [#allocation5], 1 }

</bundles_post_ra>
